<compile_context>
chip_gen: v6e
topology: v6e:2x2x1
jax: 0.10.0
libtpu: 0.0.40
codegen_flags: <defaults>
</compile_context>

<pallas_src>
import math
import functools

import jax
import jax.numpy as jnp
from jax.experimental import pallas as pl
from jax.experimental.pallas import tpu as pltpu


# ----------------------------------------------------------------------------
# Kernel
# ----------------------------------------------------------------------------
def _attn_kernel(q_ref, kT_ref, v_ref, p_ref,          # per-(b, n-tile) inputs
                 wq_ref, bq_ref,                        # resident weights
                 hid_ref, attn_ref,                     # outputs
                 *, num_heads, d_head):
    inv_sqrt_d = 1.0 / math.sqrt(d_head)

    xq = q_ref[0]            # (Tn, C)    bf16
    kT = kT_ref[0]           # (H, d, M)  bf16  (pre-projected, head-split, M lane-dense)
    vh = v_ref[0]            # (H, M, d)  bf16  (pre-projected, head-split)
    p = p_ref[0]             # (Tn, M)    f32   (proj_p already contracted in XLA)

    # Q projection: x @ Wq_t + bq (Wq pre-transposed in the wrapper), then fold
    # the 1/sqrt(d) scale into q so scores need no per-head rescale.
    q = jnp.dot(xq, wq_ref[...], preferred_element_type=jnp.float32) + bq_ref[...]
    q = q * inv_sqrt_d                                                  # (Tn, C) f32
    tn = q.shape[0]
    qh = jnp.transpose(q.reshape(tn, num_heads, d_head),
                       (1, 0, 2)).astype(jnp.bfloat16)                  # (H, Tn, d) bf16

    # One batched-head score matmul for all heads (bf16 in, f32 acc).
    s = jnp.einsum("hnd,hdm->hnm", qh, kT,
                   preferred_element_type=jnp.float32)                  # (H, Tn, M) f32
    s = s + (p * inv_sqrt_d)[None, :, :]

    # Numerically stable softmax over keys; divide -> EUP reciprocal + multiply.
    s_max = jnp.max(s, axis=-1, keepdims=True)
    e = jnp.exp(s - s_max)
    denom = jnp.sum(e, axis=-1, keepdims=True)
    a = e * pl.reciprocal(denom, approx=True)                           # (H, Tn, M) f32

    # Single lane-dense store of the attention block.
    attn_ref[0] = a

    # One batched PV matmul (bf16 probs, f32 acc), then one (Tn, C) store.
    hid3 = jnp.einsum("hnm,hmd->hnd", a.astype(jnp.bfloat16), vh,
                      preferred_element_type=jnp.float32)               # (H, Tn, d) f32
    hid_ref[0] = jnp.transpose(hid3, (1, 0, 2)).reshape(tn, num_heads * d_head)


# ----------------------------------------------------------------------------
# VMEM-aware tiling helpers
# ----------------------------------------------------------------------------
def _tpu_vmem_capacity_bytes():
    try:
        return int(pltpu.get_tpu_info().vmem_capacity_bytes)
    except Exception:
        return 64 * 1024 * 1024      # v7x-safe fallback


def _vmem_needed_bytes(tile_n, m, c, h, d):
    """Buffer-multiplicity-aware working-set estimate for one grid step."""
    bf16, f32 = 2, 4
    streamed = (tile_n * c * bf16        # q tile
                + tile_n * m * f32       # p tile
                + h * d * m * bf16       # K^T block (per batch)
                + h * m * d * bf16)      # V block   (per batch)
    outputs = (tile_n * c * f32          # hidden block
               + h * tile_n * m * f32)   # attn block
    weights = c * c * bf16 + c * f32     # Wq_t + bq: constant index map -> single-buffered
    interm = (2 * h * tile_n * m * f32   # live scores / exp copies
              + h * tile_n * m * bf16    # bf16 probs feeding PV
              + 3 * tile_n * c * f32)    # q (f32), qh, hid intermediates
    return 2 * (streamed + outputs) + weights + interm   # streamed/outputs double-buffered


def _pick_tile_n(n, m, c, h, d, budget):
    cands = [t for t in (1024, 512, 256, 128, 64, 32, 16, 8) if n % t == 0]
    if not cands:
        return n
    for t in cands:
        if _vmem_needed_bytes(t, m, c, h, d) <= budget:
            return t
    return cands[-1]


def _vmem_limit_bytes(needed, capacity):
    lim = max(32 * 1024 * 1024, int(1.25 * needed))
    return int(min(int(0.9 * capacity), lim))


# ----------------------------------------------------------------------------
# Wrapper
# ----------------------------------------------------------------------------
def swift_rpe_mha(input_q, input_k, input_v, embed_qk_stage, params, num_heads):
    """Pallas forward pass for the non-windowed branch. embed_qk_stage: (B, N, M, 3)."""
    B, N, C = input_q.shape
    M = input_k.shape[1]
    assert C % num_heads == 0
    d = C // num_heads

    # --- XLA-side hoists (grid-invariant work) -------------------------------
    # proj_p: Linear(3 -> 1) contracted once; kernel streams (B, N, M).
    wp = params["wp"].reshape(3).astype(jnp.float32)
    bp = params["bp"].reshape(()).astype(jnp.float32)
    p = jnp.einsum("bnmk,k->bnm", embed_qk_stage.astype(jnp.float32), wp) + bp

    # K/V projections done once per batch in XLA (they are independent of the
    # N-tile grid axis), then head-split and laid out for straight-line MXU use:
    #   K^T: (B, H, d, M)  — score contraction 'hnd,hdm->hnm', M lane-dense
    #   V  : (B, H, M, d)  — PV contraction    'hnm,hmd->hnd'
    k_proj = input_k.astype(jnp.float32) @ params["wk"].T + params["bk"]   # (B, M, C)
    v_proj = input_v.astype(jnp.float32) @ params["wv"].T + params["bv"]   # (B, M, C)
    kT = k_proj.reshape(B, M, num_heads, d).transpose(0, 2, 3, 1).astype(jnp.bfloat16)
    vh = v_proj.reshape(B, M, num_heads, d).transpose(0, 2, 1, 3).astype(jnp.bfloat16)

    xq = input_q.astype(jnp.bfloat16)
    wq_t = params["wq"].T.astype(jnp.bfloat16)            # kernel computes x @ Wq_t
    bq = params["bq"].reshape(1, C).astype(jnp.float32)

    # --- VMEM-aware tiling ----------------------------------------------------
    capacity = _tpu_vmem_capacity_bytes()
    tile_n = _pick_tile_n(N, M, C, num_heads, d, budget=int(0.7 * capacity))
    needed = _vmem_needed_bytes(tile_n, M, C, num_heads, d)
    vmem_limit = _vmem_limit_bytes(needed, capacity)
    n_tiles = N // tile_n

    kernel = functools.partial(_attn_kernel, num_heads=num_heads, d_head=d)

    grid_spec = pltpu.PrefetchScalarGridSpec(
        num_scalar_prefetch=0,
        grid=(B, n_tiles),                 # N tiles innermost: K/V stay resident per batch
        in_specs=[
            pl.BlockSpec((1, tile_n, C), lambda b, n: (b, n, 0)),            # q tile (bf16)
            pl.BlockSpec((1, num_heads, d, M), lambda b, n: (b, 0, 0, 0)),   # K^T per batch
            pl.BlockSpec((1, num_heads, M, d), lambda b, n: (b, 0, 0, 0)),   # V   per batch
            pl.BlockSpec((1, tile_n, M), lambda b, n: (b, n, 0)),            # p tile (f32)
            pl.BlockSpec((C, C), lambda b, n: (0, 0)),                       # Wq^T (resident)
            pl.BlockSpec((1, C), lambda b, n: (0, 0)),                       # bq   (resident)
        ],
        out_specs=[
            pl.BlockSpec((1, tile_n, C), lambda b, n: (b, n, 0)),            # hidden
            pl.BlockSpec((1, num_heads, tile_n, M), lambda b, n: (b, 0, n, 0)),  # attn
        ],
    )

    hidden, attn = pl.pallas_call(
        kernel,
        grid_spec=grid_spec,
        out_shape=(
            jax.ShapeDtypeStruct((B, N, C), jnp.float32),
            jax.ShapeDtypeStruct((B, num_heads, N, M), jnp.float32),
        ),
        compiler_params=pltpu.CompilerParams(
            dimension_semantics=("parallel", "parallel"),
            vmem_limit_bytes=vmem_limit),
    )(xq, kT, vh, p, wq_t, bq)
    return hidden, attn


# ----------------------------------------------------------------------------
# Pure-JAX reference mirroring the PyTorch else-branch
# ----------------------------------------------------------------------------
def reference_forward(input_q, input_k, input_v, embed, params, num_heads):
    B, N, C = input_q.shape
    M = input_k.shape[1]
    d = C // num_heads
    q = input_q @ params["wq"].T + params["bq"]
    k = input_k @ params["wk"].T + params["bk"]
    v = input_v @ params["wv"].T + params["bv"]
    q = q.reshape(B, N, num_heads, d).transpose(0, 2, 1, 3)
    k = k.reshape(B, M, num_heads, d).transpose(0, 2, 1, 3)
    v = v.reshape(B, M, num_heads, d).transpose(0, 2, 1, 3)
    p = embed @ params["wp"].T + params["bp"]          # (B, N, M, 1)
    p = p[..., 0][:, None, :, :]                       # (B, 1, N, M) == repeat over heads
    scores = jnp.einsum("bhnc,bhmc->bhnm", q, k)
    scores = (scores + p) / math.sqrt(d)
    attn = jax.nn.softmax(scores, axis=-1)
    hidden = jnp.einsum("bhnm,bhmc->bhnc", attn, v)
    hidden = hidden.transpose(0, 2, 1, 3).reshape(B, N, C)
    return hidden, attn


if __name__ == "__main__":
    B, N, M, C, H = 2, 16, 8, 32, 4   # d_model=32, num_heads=4, stage=2 (no windowing)

    key = jax.random.PRNGKey(0)
    ks = jax.random.split(key, 12)
    scale = 0.1
    params = {
        "wq": scale * jax.random.normal(ks[0], (C, C), jnp.float32),
        "bq": scale * jax.random.normal(ks[1], (C,), jnp.float32),
        "wk": scale * jax.random.normal(ks[2], (C, C), jnp.float32),
        "bk": scale * jax.random.normal(ks[3], (C,), jnp.float32),
        "wv": scale * jax.random.normal(ks[4], (C, C), jnp.float32),
        "bv": scale * jax.random.normal(ks[5], (C,), jnp.float32),
        "wp": scale * jax.random.normal(ks[6], (1, 3), jnp.float32),
        "bp": scale * jax.random.normal(ks[7], (1,), jnp.float32),
    }
    input_q = jax.random.normal(ks[8], (B, N, C), jnp.float32)
    input_k = jax.random.normal(ks[9], (B, M, C), jnp.float32)
    input_v = jax.random.normal(ks[10], (B, M, C), jnp.float32)
    embed_qk_stage = jax.random.normal(ks[11], (B, N, M, 3), jnp.float32)

    hidden, attn = swift_rpe_mha(input_q, input_k, input_v, embed_qk_stage,
                                 params, num_heads=H)
    jax.block_until_ready((hidden, attn))

    hidden_ref, attn_ref = reference_forward(input_q, input_k, input_v,
                                             embed_qk_stage, params, num_heads=H)
    assert hidden.shape == (B, N, C) and attn.shape == (B, H, N, M)
    # bf16 MXU operands + approx EUP reciprocal => ~1e-2-level tolerances.
    assert jnp.allclose(hidden, hidden_ref, atol=2e-2, rtol=2e-2), (
        float(jnp.max(jnp.abs(hidden - hidden_ref))))
    assert jnp.allclose(attn, attn_ref, atol=2e-2, rtol=2e-2), (
        float(jnp.max(jnp.abs(attn - attn_ref))))
    print("KERNEL_OK")
</pallas_src>

<mosaic_0001>
module attributes {stable_mosaic.version = 11 : i64} {
  func.func @_attn_kernel(%arg0: i32, %arg1: i32, %arg2: memref<1x16x32xbf16, #tpu.memory_space<vmem>>, %arg3: memref<1x4x8x8xbf16, #tpu.memory_space<vmem>>, %arg4: memref<1x4x8x8xbf16, #tpu.memory_space<vmem>>, %arg5: memref<1x16x8xf32, #tpu.memory_space<vmem>>, %arg6: memref<32x32xbf16, #tpu.memory_space<vmem>>, %arg7: memref<1x32xf32, #tpu.memory_space<vmem>>, %arg8: memref<1x16x32xf32, #tpu.memory_space<vmem>>, %arg9: memref<1x4x16x8xf32, #tpu.memory_space<vmem>>) attributes {dimension_semantics = [#tpu.dimension_semantics<parallel>, #tpu.dimension_semantics<parallel>], iteration_bounds = array<i64: 2, 1>, scalar_prefetch = 0 : i64, scratch_operands = 0 : i64, tpu.core_type = #tpu.core_type<tc>, window_params = [{transform_indices = @transform_0, window_bounds = array<i64: 1, 16, 32>}, {transform_indices = @transform_1, window_bounds = array<i64: 1, 4, 8, 8>}, {transform_indices = @transform_2, window_bounds = array<i64: 1, 4, 8, 8>}, {transform_indices = @transform_3, window_bounds = array<i64: 1, 16, 8>}, {pipeline_mode = #tpu.pipeline_mode<synchronous>, transform_indices = @transform_4, window_bounds = array<i64: 32, 32>}, {pipeline_mode = #tpu.pipeline_mode<synchronous>, transform_indices = @transform_5, window_bounds = array<i64: 1, 32>}, {transform_indices = @transform_6, window_bounds = array<i64: 1, 16, 32>}, {transform_indices = @transform_7, window_bounds = array<i64: 1, 4, 16, 8>}]} {
    %c0 = arith.constant 0 : index
    %c0_0 = arith.constant 0 : index
    %c0_1 = arith.constant 0 : index
    %0 = vector.load %arg2[%c0, %c0_0, %c0_1] : memref<1x16x32xbf16, #tpu.memory_space<vmem>>, vector<1x16x32xbf16>
    %1 = vector.shape_cast %0 : vector<1x16x32xbf16> to vector<16x32xbf16>
    %c0_2 = arith.constant 0 : index
    %c0_3 = arith.constant 0 : index
    %c0_4 = arith.constant 0 : index
    %c0_5 = arith.constant 0 : index
    %2 = vector.load %arg3[%c0_2, %c0_3, %c0_4, %c0_5] : memref<1x4x8x8xbf16, #tpu.memory_space<vmem>>, vector<1x4x8x8xbf16>
    %3 = vector.shape_cast %2 : vector<1x4x8x8xbf16> to vector<4x8x8xbf16>
    %c0_6 = arith.constant 0 : index
    %c0_7 = arith.constant 0 : index
    %c0_8 = arith.constant 0 : index
    %c0_9 = arith.constant 0 : index
    %4 = vector.load %arg4[%c0_6, %c0_7, %c0_8, %c0_9] : memref<1x4x8x8xbf16, #tpu.memory_space<vmem>>, vector<1x4x8x8xbf16>
    %5 = vector.shape_cast %4 : vector<1x4x8x8xbf16> to vector<4x8x8xbf16>
    %c0_10 = arith.constant 0 : index
    %c0_11 = arith.constant 0 : index
    %c0_12 = arith.constant 0 : index
    %6 = vector.load %arg5[%c0_10, %c0_11, %c0_12] : memref<1x16x8xf32, #tpu.memory_space<vmem>>, vector<1x16x8xf32>
    %7 = vector.shape_cast %6 : vector<1x16x8xf32> to vector<16x8xf32>
    %c0_13 = arith.constant 0 : index
    %c0_14 = arith.constant 0 : index
    %8 = vector.load %arg6[%c0_13, %c0_14] : memref<32x32xbf16, #tpu.memory_space<vmem>>, vector<32x32xbf16>
    %cst = arith.constant dense<0.000000e+00> : vector<16x32xf32>
    %9 = tpu.matmul %1, %8, %cst {dimension_numbers = #tpu.dot_dimension_numbers<[1], [0], [0], [1], [0, 0, 1, 1], [], []>} : vector<16x32xbf16>, vector<32x32xbf16>, vector<16x32xf32> -> vector<16x32xf32>
    %c0_15 = arith.constant 0 : index
    %c0_16 = arith.constant 0 : index
    %10 = vector.load %arg7[%c0_15, %c0_16] : memref<1x32xf32, #tpu.memory_space<vmem>>, vector<1x32xf32>
    %11 = vector.broadcast %10 : vector<1x32xf32> to vector<16x32xf32>
    %12 = arith.addf %9, %11 : vector<16x32xf32>
    %cst_17 = arith.constant 0.353553385 : f32
    %13 = vector.broadcast %cst_17 : f32 to vector<16x32xf32>
    %14 = arith.mulf %12, %13 : vector<16x32xf32>
    %15 = vector.shape_cast %14 : vector<16x32xf32> to vector<16x4x8xf32>
    %16 = tpu.transpose %15, [1, 0, 2] : vector<16x4x8xf32> -> vector<4x16x8xf32>
    %17 = arith.truncf %16 : vector<4x16x8xf32> to vector<4x16x8xbf16>
    "tpu.trace_start"() <{level = 10 : i32, message = "hnd,hdm->hnm"}> : () -> ()
    %cst_18 = arith.constant dense<0.000000e+00> : vector<4x16x8xf32>
    %18 = tpu.matmul %17, %3, %cst_18 {dimension_numbers = #tpu.dot_dimension_numbers<[2], [1], [1], [2], [0, 0, 0, 1, 1, 2], [0], [0]>} : vector<4x16x8xbf16>, vector<4x8x8xbf16>, vector<4x16x8xf32> -> vector<4x16x8xf32>
    "tpu.trace_stop"() : () -> ()
    %cst_19 = arith.constant 0.353553385 : f32
    %19 = vector.broadcast %cst_19 : f32 to vector<16x8xf32>
    %20 = arith.mulf %7, %19 : vector<16x8xf32>
    %21 = vector.shape_cast %20 : vector<16x8xf32> to vector<1x16x8xf32>
    %22 = vector.broadcast %21 : vector<1x16x8xf32> to vector<4x16x8xf32>
    %23 = arith.addf %18, %22 : vector<4x16x8xf32>
    %cst_20 = arith.constant dense<0xFF800000> : vector<4x16xf32>
    %24 = vector.multi_reduction <maximumf>, %23, %cst_20 [2] : vector<4x16x8xf32> to vector<4x16xf32>
    %25 = vector.shape_cast %24 : vector<4x16xf32> to vector<4x16x1xf32>
    %26 = vector.broadcast %25 : vector<4x16x1xf32> to vector<4x16x8xf32>
    %27 = arith.subf %23, %26 : vector<4x16x8xf32>
    %28 = math.exp %27 : vector<4x16x8xf32>
    %cst_21 = arith.constant dense<0.000000e+00> : vector<4x16xf32>
    %29 = vector.multi_reduction <add>, %28, %cst_21 [2] : vector<4x16x8xf32> to vector<4x16xf32>
    %30 = vector.shape_cast %29 : vector<4x16xf32> to vector<4x16x1xf32>
    %31 = tpu.reciprocal %30 {approx = true} : vector<4x16x1xf32> -> vector<4x16x1xf32>
    %32 = vector.broadcast %31 : vector<4x16x1xf32> to vector<4x16x8xf32>
    %33 = arith.mulf %28, %32 : vector<4x16x8xf32>
    %c0_22 = arith.constant 0 : index
    %c0_23 = arith.constant 0 : index
    %c0_24 = arith.constant 0 : index
    %c0_25 = arith.constant 0 : index
    %34 = vector.load %arg9[%c0_22, %c0_23, %c0_24, %c0_25] : memref<1x4x16x8xf32, #tpu.memory_space<vmem>>, vector<1x4x16x8xf32>
    %35 = vector.shape_cast %34 : vector<1x4x16x8xf32> to vector<4x16x8xf32>
    %36 = vector.shape_cast %33 : vector<4x16x8xf32> to vector<1x4x16x8xf32>
    tpu.vector_store %arg9[%c0_22, %c0_23, %c0_24, %c0_25], %36 {strides = array<i32>} : memref<1x4x16x8xf32, #tpu.memory_space<vmem>>, vector<1x4x16x8xf32>,
    %37 = arith.truncf %33 : vector<4x16x8xf32> to vector<4x16x8xbf16>
    "tpu.trace_start"() <{level = 10 : i32, message = "hnm,hmd->hnd"}> : () -> ()
    %cst_26 = arith.constant dense<0.000000e+00> : vector<4x16x8xf32>
    %38 = tpu.matmul %37, %5, %cst_26 {dimension_numbers = #tpu.dot_dimension_numbers<[2], [1], [1], [2], [0, 0, 0, 1, 1, 2], [0], [0]>} : vector<4x16x8xbf16>, vector<4x8x8xbf16>, vector<4x16x8xf32> -> vector<4x16x8xf32>
    "tpu.trace_stop"() : () -> ()
    %39 = tpu.transpose %38, [1, 0, 2] : vector<4x16x8xf32> -> vector<16x4x8xf32>
    %40 = vector.shape_cast %39 : vector<16x4x8xf32> to vector<16x32xf32>
    %c0_27 = arith.constant 0 : index
    %c0_28 = arith.constant 0 : index
    %c0_29 = arith.constant 0 : index
    %41 = vector.load %arg8[%c0_27, %c0_28, %c0_29] : memref<1x16x32xf32, #tpu.memory_space<vmem>>, vector<1x16x32xf32>
    %42 = vector.shape_cast %41 : vector<1x16x32xf32> to vector<16x32xf32>
    %43 = vector.shape_cast %40 : vector<16x32xf32> to vector<1x16x32xf32>
    tpu.vector_store %arg8[%c0_27, %c0_28, %c0_29], %43 {strides = array<i32>} : memref<1x16x32xf32, #tpu.memory_space<vmem>>, vector<1x16x32xf32>,
    return
  }
  func.func @transform_0(%arg0: i32, %arg1: i32) -> (i32, i32, i32) {
    %c0_i32 = arith.constant 0 : i32
    %c0_i32_0 = arith.constant 0 : i32
    return %arg0, %arg1, %c0_i32 : i32, i32, i32
  }
  func.func @transform_1(%arg0: i32, %arg1: i32) -> (i32, i32, i32, i32) {
    %c0_i32 = arith.constant 0 : i32
    %c0_i32_0 = arith.constant 0 : i32
    %c0_i32_1 = arith.constant 0 : i32
    %c0_i32_2 = arith.constant 0 : i32
    return %arg0, %c0_i32, %c0_i32_0, %c0_i32_1 : i32, i32, i32, i32
  }
  func.func @transform_2(%arg0: i32, %arg1: i32) -> (i32, i32, i32, i32) {
    %c0_i32 = arith.constant 0 : i32
    %c0_i32_0 = arith.constant 0 : i32
    %c0_i32_1 = arith.constant 0 : i32
    %c0_i32_2 = arith.constant 0 : i32
    return %arg0, %c0_i32, %c0_i32_0, %c0_i32_1 : i32, i32, i32, i32
  }
  func.func @transform_3(%arg0: i32, %arg1: i32) -> (i32, i32, i32) {
    %c0_i32 = arith.constant 0 : i32
    %c0_i32_0 = arith.constant 0 : i32
    return %arg0, %arg1, %c0_i32 : i32, i32, i32
  }
  func.func @transform_4(%arg0: i32, %arg1: i32) -> (i32, i32) {
    %c0_i32 = arith.constant 0 : i32
    %c0_i32_0 = arith.constant 0 : i32
    %c0_i32_1 = arith.constant 0 : i32
    return %c0_i32, %c0_i32_0 : i32, i32
  }
  func.func @transform_5(%arg0: i32, %arg1: i32) -> (i32, i32) {
    %c0_i32 = arith.constant 0 : i32
    %c0_i32_0 = arith.constant 0 : i32
    %c0_i32_1 = arith.constant 0 : i32
    return %c0_i32, %c0_i32_0 : i32, i32
  }
  func.func @transform_6(%arg0: i32, %arg1: i32) -> (i32, i32, i32) {
    %c0_i32 = arith.constant 0 : i32
    %c0_i32_0 = arith.constant 0 : i32
    return %arg0, %arg1, %c0_i32 : i32, i32, i32
  }
  func.func @transform_7(%arg0: i32, %arg1: i32) -> (i32, i32, i32, i32) {
    %c0_i32 = arith.constant 0 : i32
    %c0_i32_0 = arith.constant 0 : i32
    %c0_i32_1 = arith.constant 0 : i32
    return %arg0, %c0_i32, %arg1, %c0_i32_0 : i32, i32, i32, i32
  }
}

</mosaic_0001>

<bundles_post_ra>
// kernel: tpu_custom_call.1
= control target key start
LH: loop header
LB: loop body
LE: loop exit
PB: predicated region body
PF: predicated region fallthrough
CT: control target
= control target key end

     0   :  { %s2652_s0 = inlined_call_operand.vmem [shape: bf16[2,16,32], index: 0, kind: input, shape index: {}]   ;;  %s2653_s1 = inlined_call_operand.vmem [shape: bf16[2,4,8,8], index: 1, kind: input, shape index: {}]   ;;  %s2654_s2 = inlined_call_operand.hbm [shape: bf16[2,4,8,8], index: 2, kind: input, shape index: {}]   ;;  %s2655_s3 = inlined_call_operand.vmem [shape: f32[2,16,8], index: 3, kind: input, shape index: {}]   ;;  %s2656_s4 = inlined_call_operand.hbm [shape: bf16[32,32], index: 4, kind: input, shape index: {}]   ;;  %s2657_s5 = inlined_call_operand.vmem [shape: f32[1,32], index: 5, kind: input, shape index: {}]   ;;  %s2658_s6 = inlined_call_operand.hbm [shape: f32[2,16,32], index: 6, kind: output, shape index: {0}]   ;;  %s2659_s7 = inlined_call_operand.vmem [shape: f32[2,4,16,8], index: 7, kind: output, shape index: {1}]  }
   0x1   :  { %2666 = sst [smem:[#allocation14_spill]] %s2656_s4 }
   0x2   :  { %13 = vsyncpa [#allocation3], 0 }
   0x3   :  { %15 = vsyncpa [#allocation3 + $0x1], 0 }
   0x4   :  { %16 = vsyncpa [#allocation6], 0 }
   0x5   :  { %17 = vsyncpa [#allocation4], 0 }
   0x6   :  { %19 = vsyncpa [#allocation4 + $0x1], 0  ;;  %s2265_s24 = smov 0   ;;  %s2267_s25 = smov 0  }
   0x7   :  { %s2269_s26 = smov 0   ;;  %s2271_s27 = smov 0  }
   0x8   :  { %s2273_s28 = smov 0   ;;  %s2275_s29 = smov 0  }
   0x9 LB: > { %2667 = sst [smem:[#allocation11_spill]] %s2203_s28  ;;  %s1821_s30 = sadd.s32 4294967295, %s2207_s29   ;;  %s2207_s29 = sphi %s2275_s29, %s25_s29   ;;  %s2203_s28 = sphi %s2273_s28, %s2687_s28   ;;  %s2199_s27 = sphi %s2271_s27, %s2686_s27   ;;  %s2195_s26 = sphi %s2269_s26, %s2690_s26   ;;  %s2191_s25 = sphi %s2267_s25, %s2689_s25   ;;  %s2187_s24 = sphi %s2265_s24, %s2688_s24  }
   0xa   : > { %s1822_s8 = sadd.s32 4294967294, %s2207_s29   ;;  %p111_p0 = scmp.ne.s32.totalorder %s2191_s25, %s2187_s24 }
   0xb   : > { %p2299_p1 = scmp.eq.s32.totalorder %s1821_s30, 0  ;;  %p2303_p2 = scmp.eq.s32.totalorder %s1821_s30, 1 }
   0xc   : > { %p213_p3 = scmp.eq.s32.totalorder %s1822_s8, 1  ;;  %p1823_p5 = scmp.ge.s32.totalorder %s2207_s29, 1 }
   0xd   : > { %p2309_p4 = por %p2299_p1, %p111_p0  ;;  %p248_p7 = scmp.lt.s32.totalorder %s2207_s29, 3 }
   0xe   : > { %p2314_p6 = por %p213_p3, %p111_p0  ;;  %s2209_s14 = smov [#allocation5]  }
   0xf   : > { %s2670_s11 = scalar_select %p2309_p4, 1, 0 }
  0x10   : > { %s2671_s12 = scalar_select %p2314_p6, 1, 0 }
  0x11   : > { %p2319_p8 = pnand %p1823_p5, %p248_p7  ;;  %s260_s15 = sshll.u32 %s2209_s14, 4  ;;  %s261_s15 = int_to_ptr.vmem [resolvable:$true] %s260_s15 }
  0x12   : > { %2672 = sst [smem:[#allocation12_spill]] %s2671_s12  ;;  %s37_s17 = sadd.s32 1, %s2203_s28 }
  0x13   : > { %p1956_p9 = pneg %p2319_p8  ;;  %s2080_s18 = scalar_lea.vmem %s261_s15, 256 }
  0x14   : > { %p2081_p13 = scmp.ne.s32.totalorder %s261_s15, %s2080_s18  ;;  %p2088_p5 = scmp.lt.s32.totalorder %s261_s15, %s261_s15 }
  0x15   : > { %p2328_p11 = pnand %p1956_p9, %p2299_p1  ;;  %p2089_p7 = scmp.lt.s32.totalorder %s2080_s18, %s2080_s18 }
  0x17   : > { %p2071_p12 = pneg %p2328_p11  ;;  %p2090_p6 = por %p2089_p7, %p2088_p5 }
  0x19   : > { %p2083_p0 = pnand %p2081_p13, %p2071_p12 }
  0x1b   : > { %p2084_p3 = pneg %p2083_p0 }
  0x1d   : > { %p2091_p4 = pnand %p2090_p6, %p2084_p3 }
  0x1f   : > { %2094 = shalt.err (!%p2091_p4)
}
  0x20   : > { %s2661_s19 = smov 64   ;;  %s2662_s20 = smov 4  }
  0x21   : > { %s2675_s4 = sld [smem:[#allocation14_spill]]  ;;  %p39_p4 = scmp.ge.s32.totalorder %s37_s17, 2 }
  0x22   : > { %s98_s23 = sadd.s32 1, %s2195_s26  ;;  %p105_p6 = scmp.ne.s32.totalorder %s2195_s26, %s2191_s25 }
  0x23   : > { %p106_p9 = scmp.eq.s32.totalorder %s2207_s29, 0  ;;  %s2692_s17 = smov (%p39_p4, %s37_s17), 0 }
  0x24   : > { %2676 = sst [smem:[#allocation13_spill]] %s2692_s17  ;;  %p2355_p13 = por %p2303_p2, %p105_p6 }
  0x25   : > { %p2349_p12 = por %p106_p9, %p105_p6  ;;  %s95_s14 = ssub.s32 %s2203_s28, %s2692_s17 }
  0x26   : > { %p1969_p0 = scmp.lt.s32.totalorder %s2207_s29, 2  ;;  %s1867_s21 = sshll.u32 %s2203_s28, 8 }
  0x27   : > { %1959 = dma.hbm_to_vmem [thread:$0]  (!%p2328_p11), %s2675_s4, 256, %s261_s15, [#allocation6], %s2661_s19, %s2661_s19, %s2662_s20  }
  0x28   : > { %p96_p11 = scmp.eq.s32.totalorder %s95_s14, 0  ;;  %s298_s15 = sand.u32 1, %s2195_s26  }
  0x29   : > { %s1826_s16 = sshll.u32 %s298_s15, 4  ;;  %s308_s20 = scalar_lea.hbm %s2654_s2, %s1867_s21 }
  0x2a   : > { %s2364_s18 = scalar_select %p96_p11, %s2195_s26, %s98_s23  }
  0x2b   : > { %s302_s4 = scalar_lea.vmem [#allocation2], %s1826_s16  ;;  %p2372_p2 = pnand %p1969_p0, %p2349_p12 }
  0x2c   : > { %s309_s12 = sshll.u32 %s302_s4, 4  ;;  %s299_s17 = scalar_lea.sflag [#allocation3], %s298_s15  ;;  %s310_s12 = int_to_ptr.vmem [resolvable:$true] %s309_s12 }
  0x2d   : > { %p2097_p3 = pneg %p2372_p2  ;;  %s2108_s14 = scalar_lea.vmem %s310_s12, 256 }
  0x2e   : > { %p2109_p5 = scmp.ne.s32.totalorder %s310_s12, %s2108_s14  ;;  %s2212_s23 = smov [#allocation2]  }
  0x2f   : > { %s2113_s28 = sshll.u32 %s2212_s23, 4  ;;  %s2114_s28 = int_to_ptr.vmem [resolvable:$false] %s2113_s28 }
  0x30   : > { %p2111_p7 = pnand %p2109_p5, %p2097_p3  ;;  %s2115_s19 = scalar_lea.vmem %s2114_s28, 512 }
  0x31   : > { %p2116_p6 = scmp.lt.s32.totalorder %s310_s12, %s2114_s28  ;;  %p2117_p9 = scmp.lt.s32.totalorder %s2115_s19, %s2108_s14 }
  0x32   : > { %p2112_p4 = pneg %p2111_p7 }
  0x33   : > { %p2118_p11 = por %p2117_p9, %p2116_p6 }
  0x35   : > { %p2119_p10 = pnand %p2118_p11, %p2112_p4 }
  0x37   : > { %2122 = shalt.err (!%p2119_p10)
}
  0x38   : > { %s2680_s4 = smov 4   ;;  %s2681_s30 = smov 64  }
  0x39   : > { %1963 = dma.hbm_to_vmem [thread:$0]  (!%p2372_p2), %s308_s20, 256, %s310_s12, %s299_s17, %s2681_s30, %s2681_s30, %s2680_s4  }
  0x3a   : > { %334 = sbr.rel (%p2319_p8) target bundleno = 1300 (0x514), region = 44  ;;  %s2386_s15 = sand.u32 (!%p2319_p8), 1, %s2191_s25  }
  0x3b   : > { %s1830_s28 = sshll.u32 (!%p2319_p8), %s2386_s15, 4  ;;  %s337_s16 = scalar_lea.sflag (!%p2319_p8), [#allocation3], %s2386_s15 }
  0x3c   : > { %s2392_s21 = scalar_lea.vmem (!%p2319_p8), [#allocation2], %s1830_s28  ;;  %p2682_p10 = scmp.ne.s32.totalorder (!%p2319_p8), %s2670_s11, 0 }
  0x3f   : > { %2174 = dma.done.wait (%p2682_p10), %s337_s16, 256  }
  0x40   : > { %2176 = vsyncadd (%p2682_p10), %s337_s16, 4294967040 }
  0x41   : > { %2178 = dma.done.wait (%p2299_p1), [#allocation6], 256  }
  0x42   : > { %2180 = vsyncadd (%p2299_p1), [#allocation6], 4294967040  ;;  %p408_p8 = scmp.lt.s32.totalorder %s2199_s27, 1  ;;  %v2213_v0 = vmov 0.0   ;;  %vm2214_vm0 = vmmov 0   ;;  %v2034_v1 = vld [vmem:[#allocation5 + $0x8] sm:$0xff]   ;;  %v556_v19 = vlaneseq }
  0x43   : > { %1892 = vmatprep.subr.bf16.mxu0 %v2213_v0  ;;  %1896 = vmatprep.mubr.msk.bf16.mxu0 %vm2214_vm0, %v2213_v0  ;;  %v2035_v2 = vld [vmem:[#allocation5] sm:$0xff]   ;;  %vm484_vm1 = vcmask 261120   ;;  %s2215_s10 = smov 112   ;;  %s2216_s14 = smov 120   ;;  %vm833_vm2 = vcmask 1043456   ;;  %vm829_vm3 = vcmask 64512  }
  0x44   : > { %s2407_s12 = scalar_select %p408_p8, %s2199_s27, 1  ;;  %1900 = vmatprep.subr.bf16.mxu1 %v2213_v0  ;;  %1902 = vmatprep.mubr.msk.bf16.mxu1 %vm2214_vm0, %v2213_v0  ;;  %v1841_v4 = vld [vmem:[%s2657_s5] ss:$0 sm:$0xff]  ;;  %v2218_v17 = vmov 1983009808   ;;  %v557_v25 = vshrl.u32 %v556_v19, 7 }
  0x45   : > { %1893 = vmatpush3.bf16.msra.mxu0 %v2034_v1  ;;  %s2217_s23 = smov 104   ;;  %v554_v18 = vunpack.c.l.s4 %v2218_v17  ;;  %v2219_v22 = vmov 1934713408   ;;  %vm1605_vm4 = vcmask 130048   ;;  %vm1608_vm5 = vcmask 195584   ;;  %s1872_s4 = sshll.u32 %s2199_s27, 8 }
  0x46   : > { %s1868_s9 = sshll.u32 %s2407_s12, 3  ;;  %1894 = vmatprep.subr.bf16.mxu0 %v2213_v0  ;;  %s1869_s19 = sshll.u32 %s2407_s12, 4  ;;  %v586_v23 = vunpack.c.l.s4 %v2219_v22 }
  0x47   : > { %s415_s17 = scalar_lea.vmem %s2652_s0, %s1868_s9  ;;  %s2430_s16 = scalar_lea.vmem %s2653_s1, %s1869_s19  ;;  %v555_v24 = vunpack.c.0.s8 %v554_v18 }
  0x48   : > { %v2036_v3 = vld [vmem:[%s415_s17] sm:$0xff]   ;;  %v448_v15 = vld [vmem:[%s2430_s16 + $0x8] sm:$0xf]  ;;  %v587_v30 = vunpack.c.0.s8 %v586_v23  ;;  %s430_s13 = scalar_lea.vmem %s2655_s3, %s1869_s19  ;;  %s1871_s17 = sshll.u32 %s2407_s12, 6 }
  0x49   : > { %1895 = vmatpush3.bf16.msra.mxu0 %v2035_v2  ;;  %v446_v13 = vld [vmem:[%s2430_s16] sm:$0xf]  ;;  %v929_v16 = vsel %vm833_vm2, %v448_v15, 0  ;;  %v2438_v31 = vsub.s32 %v555_v24, %v557_v25  ;;  %s2221_s12 = smov 16   ;;  %s1614_s27 = scalar_lea.sflag [#allocation4], %s2386_s15 }
  0x4a   : > { %1912 = vmatprep.subr.bf16.mxu0 %v2213_v0  ;;  %v835_v14 = vsel %vm833_vm2, %v446_v13, 0  ;;  %v2442_v42 = vsub.s32 %v587_v30, %v557_v25  ;;  %s2223_s11 = smov [#allocation7]  }
  0x4b   : > { %1901 = vmatpush3.bf16.msra.mxu1 %v835_v14 }
  0x4c   : > { %1897 = vmatmul.mubr.msk.bf16.vlgmr.msra.gmra.mxu0 %vm484_vm1, %v2036_v3  ;;  %1906 = vmatprep.subr.bf16.mxu1 %v2213_v0 }
  0x4d   : > { %1914 = vmatprep.mubr.msk.bf16.mxu0 %vm2214_vm0, %v2213_v0  ;;  %1913 = vmatpush3.bf16.msra.mxu0 %v929_v16 }
  0x4e   : > { %1924 = vmatprep.subr.bf16.mxu0 %v2213_v0 }
 0x10c   : > { %v522_v5 = vpop.f32.mrf.mxu0 }
 0x10d   : > { %v523_v6 = vadd.f32 %v1841_v4, %v522_v5 }
 0x10e   : > { %v1898_v7 = vpop.f32.mrf.mxu0 }
 0x10f   : > { %v529_v8 = vmul.f32 0.35355338, %v523_v6 }
 0x110   : > { %v525_v9 = vpop.f32.mrf.mxu0 }
 0x111   : > { %v526_v10 = vadd.f32 %v1841_v4, %v525_v9  ;;  %539 = vrot.lane.b32.xlu1 %v529_v8, %s2215_s10  ;;  %533 = vrot.lane.b32.xlu0 %v529_v8, %s2216_s14 }
 0x112   : > { %v1899_v11 = vpop.f32.mrf.mxu0 }
 0x113   : > { %v530_v12 = vmul.f32 0.35355338, %v526_v10 }
 0x115   : > { %541 = vrot.lane.b32.xlu1 %v530_v12, %s2215_s10  ;;  %535 = vrot.lane.b32.xlu0 %v530_v12, %s2216_s14  ;;  %s2526_s10 = scalar_lea.vmem %s2659_s7, %s1871_s17  ;;  %s2222_s14 = smov 24  }
 0x119   : > { %547 = vrot.lane.b32.xlu1 %v530_v12, %s2217_s23  ;;  %545 = vrot.lane.b32.xlu0 %v529_v8, %s2217_s23  ;;  %s395_s23 = scalar_lea.vmem [#allocation7], %s1830_s28  ;;  %s2602_s28 = scalar_lea.hbm %s2658_s6, %s1872_s4 }
 0x11a   : > { %s1638_s19 = sshll.u32 %s395_s23, 4  ;;  %s2596_s19 = int_to_ptr.vmem [resolvable:$true] %s1638_s19 }
 0x11b   : > { %s2123_s9 = scalar_lea.vmem %s2596_s19, 256 }
 0x11c   : > { %p2124_p1 = scmp.ne.s32.totalorder %s2596_s19, %s2123_s9 }
 0x11e   : > { %p2125_p12 = pnand %p2124_p1, %p2355_p13 }
 0x120   : > { %p2126_p0 = pneg %p2125_p12 }
 0x183   : > { %v540_v20 = vpop.permute.xlu1 %539  ;;  %v534_v21 = vpop.permute.xlu0 %533 }
 0x184   : > { %v551_v32 = vcombine.low %v529_v8, %v540_v20  ;;  %v552_v33 = vcombine.high %v529_v8, %v540_v20 }
 0x186   : > { %v559_v47 = vrot.slane %v551_v32, %v2438_v31  ;;  %v566_v48 = vrot.slane %v552_v33, %v2438_v31 }
 0x187   : > { %v542_v26 = vpop.permute.xlu1 %541  ;;  %v536_v27 = vpop.permute.xlu0 %535 }
 0x188   : > { %v619_v28 = vcombine.low %v530_v12, %v542_v26  ;;  %v620_v29 = vcombine.high %v530_v12, %v542_v26 }
 0x18a   : > { %v627_v40 = vrot.slane %v619_v28, %v2438_v31  ;;  %v634_v41 = vrot.slane %v620_v29, %v2438_v31 }
 0x18b   : > { %v548_v34 = vpop.permute.xlu1 %547  ;;  %v546_v35 = vpop.permute.xlu0 %545 }
 0x18c   : > { %v635_v36 = vcombine.low %v536_v27, %v548_v34  ;;  %v636_v37 = vcombine.high %v536_v27, %v548_v34  ;;  %v567_v38 = vcombine.low %v534_v21, %v546_v35  ;;  %v568_v39 = vcombine.high %v534_v21, %v546_v35 }
 0x18e   : > { %v643_v43 = vrot.slane %v635_v36, %v2438_v31  ;;  %v650_v44 = vrot.slane %v636_v37, %v2438_v31  ;;  %v575_v45 = vrot.slane %v567_v38, %v2438_v31  ;;  %v582_v46 = vrot.slane %v568_v39, %v2438_v31  ;;  %v447_v36 = vld [vmem:[%s2430_s16 + $0x4] sm:$0xf] }
 0x190   : > { %v651_v49 = vcombine.low %v627_v40, %v643_v43  ;;  %v652_v50 = vcombine.high %v627_v40, %v643_v43  ;;  %v667_v51 = vcombine.low %v634_v41, %v650_v44  ;;  %v668_v52 = vcombine.high %v634_v41, %v650_v44 }
 0x191   : > { %v583_v53 = vcombine.low %v559_v47, %v575_v45  ;;  %v584_v54 = vcombine.high %v559_v47, %v575_v45  ;;  %v599_v55 = vcombine.low %v566_v48, %v582_v46  ;;  %v600_v56 = vcombine.high %v566_v48, %v582_v46  ;;  %v449_v46 = vld [vmem:[%s2430_s16 + $0xc] sm:$0xf] }
 0x192   : > { %v659_v57 = vrot.slane %v651_v49, %v2442_v42  ;;  %v666_v58 = vrot.slane %v652_v50, %v2442_v42  ;;  %v675_v59 = vrot.slane %v667_v51, %v2442_v42  ;;  %v682_v60 = vrot.slane %v668_v52, %v2442_v42  ;;  %v454_v52 = vld [vmem:[%s430_s13] sm:$0xff] }
 0x193   : > { %v591_v61 = vrot.slane %v583_v53, %v2442_v42  ;;  %v598_v62 = vrot.slane %v584_v54, %v2442_v42  ;;  %v607_v63 = vrot.slane %v599_v55, %v2442_v42  ;;  %v614_v1 = vrot.slane %v600_v56, %v2442_v42  ;;  %v455_v54 = vld [vmem:[%s430_s13 + $0x8] sm:$0xff]  ;;  %s2127_s13 = sshll.u32 %s2223_s11, 4  ;;  %s2128_s13 = int_to_ptr.vmem [resolvable:$false] %s2127_s13 }
 0x194   : > { %v755_v2 = vcombine.low %v659_v57, %v666_v58  ;;  %v1848_v3 = vcombine.high %v659_v57, %v666_v58  ;;  %v771_v4 = vcombine.low %v675_v59, %v682_v60  ;;  %v1849_v5 = vcombine.high %v675_v59, %v682_v60  ;;  %s2129_s17 = scalar_lea.vmem %s2128_s13, 512  ;;  %p2130_p2 = scmp.lt.s32.totalorder %s2596_s19, %s2128_s13 }
 0x195   : > { %v687_v6 = vcombine.low %v591_v61, %v598_v62  ;;  %v1846_v7 = vcombine.high %v591_v61, %v598_v62  ;;  %v703_v8 = vcombine.low %v607_v63, %v614_v1  ;;  %v1847_v9 = vcombine.high %v607_v63, %v614_v1  ;;  %p2131_p3 = scmp.lt.s32.totalorder %s2129_s17, %s2123_s9 }
 0x196   : > { %v762_v10 = vrot.slane %v755_v2, %v2438_v31  ;;  %v770_v11 = vrot.slane %v1848_v3, %v2438_v31  ;;  %v778_v12 = vrot.slane %v771_v4, %v2438_v31  ;;  %v786_v13 = vrot.slane %v1849_v5, %v2438_v31 }
 0x197   : > { %v694_v14 = vrot.slane %v687_v6, %v2438_v31  ;;  %v702_v15 = vrot.slane %v1846_v7, %v2438_v31  ;;  %v710_v16 = vrot.slane %v703_v8, %v2438_v31  ;;  %v718_v17 = vrot.slane %v1847_v9, %v2438_v31  ;;  %p2132_p5 = por %p2131_p3, %p2130_p2 }
 0x198   : > { %v788_v18 = vcombine.high %v762_v10, %v770_v11  ;;  %v804_v19 = vcombine.high %v778_v12, %v786_v13  ;;  %v787_v20 = vcombine.low %v762_v10, %v770_v11  ;;  %v803_v21 = vcombine.low %v778_v12, %v786_v13 }
 0x199   : > { %v720_v22 = vcombine.high %v694_v14, %v702_v15  ;;  %v736_v23 = vcombine.high %v710_v16, %v718_v17  ;;  %v719_v24 = vcombine.low %v694_v14, %v702_v15  ;;  %v735_v25 = vcombine.low %v710_v16, %v718_v17  ;;  %p2133_p7 = pnand %p2132_p5, %p2126_p0 }
 0x19a   : > { %v802_v26 = vrot.slane %v788_v18, %v2442_v42  ;;  %v818_v27 = vrot.slane %v804_v19, %v2442_v42  ;;  %v795_v28 = vrot.slane %v787_v20, %v2442_v42  ;;  %v811_v29 = vrot.slane %v803_v21, %v2442_v42 }
 0x19b   : > { %v734_v30 = vrot.slane %v720_v22, %v2442_v42  ;;  %v750_v32 = vrot.slane %v736_v23, %v2442_v42  ;;  %v727_v33 = vrot.slane %v719_v24, %v2442_v42  ;;  %v743_v34 = vrot.slane %v735_v25, %v2442_v42 }
 0x19c   : > { %v819_v35 = vcombine.low %v795_v28, %v811_v29  ;;  %v821_v37 = vcombine.low %v802_v26, %v818_v27  ;;  %v882_v41 = vsel %vm833_vm2, %v447_v36, 0  ;;  %v820_v45 = vcombine.high %v795_v28, %v811_v29 }
 0x19d   : > { %v751_v38 = vcombine.low %v727_v33, %v743_v34  ;;  %v753_v39 = vcombine.low %v734_v30, %v750_v32  ;;  %v752_v44 = vcombine.high %v727_v33, %v743_v34  ;;  %v976_v48 = vsel %vm833_vm2, %v449_v46, 0 }
 0x19e   : > { %v754_v49 = vcombine.high %v734_v30, %v750_v32  ;;  %v822_v50 = vcombine.high %v802_v26, %v818_v27  ;;  %v827_v53 = vmul.f32 0.35355338, %v454_v52  ;;  %v828_v58 = vmul.f32 0.35355338, %v455_v54 }
 0x19f   : > { %v823_v40 = vpack.c.bf16 %v819_v35, %v751_v38  ;;  %v825_v43 = vpack.c.bf16 %v821_v37, %v753_v39  ;;  %v824_v47 = vpack.c.bf16 %v820_v45, %v752_v44 }
 0x1a0   : > { %v826_v51 = vpack.c.bf16 %v822_v50, %v754_v49 }
 0x1a1   : > { %1903 = vmatmul.mubr.msk.bf16.vlgmr.msra.gmra.mxu1 %vm829_vm3, %v823_v40  ;;  %1915 = vmatmul.mubr.msk.bf16.vlgmr.msra.gmra.mxu0 %vm829_vm3, %v825_v43 }
 0x1a2   : > { %1907 = vmatpush3.bf16.msra.mxu1 %v882_v41  ;;  %1908 = vmatprep.mubr.msk.bf16.mxu1 %vm2214_vm0, %v2213_v0 }
 0x1a3   : > { %1918 = vmatprep.subr.bf16.mxu1 %v2213_v0  ;;  %1926 = vmatprep.mubr.msk.bf16.mxu0 %vm2214_vm0, %v2213_v0 }
 0x1a9   : > { %1909 = vmatmul.mubr.msk.bf16.vlgmr.msra.gmra.mxu1 %vm829_vm3, %v824_v47 }
 0x1aa   : > { %1919 = vmatpush3.bf16.msra.mxu1 %v976_v48  ;;  %1920 = vmatprep.mubr.msk.bf16.mxu1 %vm2214_vm0, %v2213_v0 }
 0x1ab   : > { %1930 = vmatprep.subr.bf16.mxu1 %v2213_v0 }
 0x1b1   : > { %1921 = vmatmul.mubr.msk.bf16.vlgmr.msra.gmra.mxu1 %vm829_vm3, %v826_v51 }
 0x1b2   : > { %1932 = vmatprep.mubr.msk.bf16.mxu1 %vm2214_vm0, %v2213_v0 }
 0x261   : > { %v871_v55 = vpop.f32.mrf.mxu1  ;;  %v965_v56 = vpop.f32.mrf.mxu0 }
 0x262   : > { %v872_v57 = vadd.f32 %v871_v55, %v827_v53  ;;  %v966_v4 = vadd.f32 %v965_v56, %v827_v53 }
 0x263   : > { %v1904_v59 = vpop.f32.mrf.mxu1  ;;  %v1916_v60 = vpop.f32.mrf.mxu0 }
 0x264   : > { %v1019_v61 = vsel %vm829_vm3, %v872_v57, -inf  ;;  %v1031_v10 = vsel %vm829_vm3, %v966_v4, -inf }
 0x265   : > { %1020 = vmax.xlane.f32.xlu0 %v1019_v61  ;;  %v874_v62 = vpop.f32.mrf.mxu1  ;;  %v968_v63 = vpop.f32.mrf.mxu0 }
 0x266   : > { %v875_v1 = vadd.f32 %v874_v62, %v828_v58  ;;  %v969_v14 = vadd.f32 %v968_v63, %v828_v58 }
 0x267   : > { %v1905_v2 = vpop.f32.mrf.mxu1  ;;  %v1917_v3 = vpop.f32.mrf.mxu0 }
 0x268   : > { %v1022_v5 = vsel %vm829_vm3, %v875_v1, -inf  ;;  %v1034_v20 = vsel %vm829_vm3, %v969_v14, -inf }
 0x269   : > { %1023 = vmax.xlane.f32.xlu1 %v1022_v5  ;;  %v918_v6 = vpop.f32.mrf.mxu1 }
 0x26a   : > { %v919_v7 = vadd.f32 %v918_v6, %v827_v53  ;;  %v451_v6 = vld [vmem:[%s2392_s21 + $0x4] sm:$0xf] }
 0x26b   : > { %v1910_v8 = vpop.f32.mrf.mxu1 }
 0x26c   : > { %v1025_v9 = vsel %vm829_vm3, %v919_v7, -inf }
 0x26d   : > { %1026 = vmax.xlane.f32.xlu0 %v1025_v9  ;;  %v921_v11 = vpop.f32.mrf.mxu1  ;;  %1032 = vmax.xlane.f32.xlu1 %v1031_v10 }
 0x26e   : > { %v922_v12 = vadd.f32 %v921_v11, %v828_v58 }
 0x26f   : > { %v1911_v13 = vpop.f32.mrf.mxu1 }
 0x270   : > { %v1028_v15 = vsel %vm829_vm3, %v922_v12, -inf }
 0x271   : > { %1029 = vmax.xlane.f32.xlu0 %v1028_v15  ;;  %v1012_v16 = vpop.f32.mrf.mxu1 }
 0x272   : > { %v1013_v17 = vadd.f32 %v1012_v16, %v827_v53 }
 0x273   : > { %v1922_v18 = vpop.f32.mrf.mxu1 }
 0x274   : > { %v1037_v19 = vsel %vm829_vm3, %v1013_v17, -inf  ;;  %v452_v18 = vld [vmem:[%s2392_s21 + $0x8] sm:$0xf] }
 0x275   : > { %v1015_v21 = vpop.f32.mrf.mxu1  ;;  %1038 = vmax.xlane.f32.xlu1 %v1037_v19  ;;  %1035 = vmax.xlane.f32.xlu0 %v1034_v20 }
 0x276   : > { %v1016_v22 = vadd.f32 %v1015_v21, %v828_v58 }
 0x277   : > { %v1923_v23 = vpop.f32.mrf.mxu1 }
 0x278   : > { %v1040_v24 = vsel %vm829_vm3, %v1016_v22, -inf }
 0x279   : > { %1041 = vmax.xlane.f32.xlu0 %v1040_v24 }
 0x2ee   : > { %v1021_v25 = vpop.xlane.xlu0 %1020 }
 0x2ef   : > { %v1043_v26 = vsub.f32 %v872_v57, %v1021_v25 }
 0x2f1   : > { %v1051_v27 = vmul.f32 1.442695, %v1043_v26 }
 0x2f2   : > { %v1024_v28 = vpop.xlane.xlu1 %1023 }
 0x2f3   : > { %2037 = vpow2.f32 %v1051_v27  ;;  %v1044_v29 = vsub.f32 %v875_v1, %v1024_v28  ;;  %v453_v27 = vld [vmem:[%s2392_s21 + $0xc] sm:$0xf] }
 0x2f5   : > { %v1053_v30 = vmul.f32 1.442695, %v1044_v29 }
 0x2f6   : > { %v1027_v32 = vpop.xlane.xlu0 %1026  ;;  %v1033_v33 = vpop.xlane.xlu1 %1032 }
 0x2f7   : > { %2039 = vpow2.f32 %v1053_v30  ;;  %v1045_v34 = vsub.f32 %v919_v7, %v1027_v32  ;;  %v1047_v35 = vsub.f32 %v966_v4, %v1033_v33  ;;  %v450_v4 = vld [vmem:[%s2392_s21] sm:$0xf]  ;;  %v1170_v7 = vsel %vm833_vm2, %v451_v6, 0  ;;  %s2220_s21 = smov 8  }
 0x2f8   : > { %v1123_v5 = vsel %vm833_vm2, %v450_v4, 0  ;;  %1931 = vmatpush3.bf16.msra.mxu1 %v1170_v7  ;;  %v1264_v33 = vsel %vm833_vm2, %v453_v27, 0 }
 0x2f9   : > { %v1055_v36 = vmul.f32 1.442695, %v1045_v34  ;;  %v1059_v37 = vmul.f32 1.442695, %v1047_v35  ;;  %1925 = vmatpush3.bf16.msra.mxu0 %v1123_v5  ;;  %1942 = vmatprep.subr.bf16.mxu1 %v2213_v0 }
 0x2fa   : > { %v1030_v38 = vpop.xlane.xlu0 %1029  ;;  %1936 = vmatprep.subr.bf16.mxu0 %v2213_v0 }
 0x2fb   : > { %2041 = vpow2.f32 %v1055_v36  ;;  %v1046_v39 = vsub.f32 %v922_v12, %v1030_v38 }
 0x2fc   : > { %2043 = vpow2.f32 %v1059_v37 }
 0x2fd   : > { %v1057_v40 = vmul.f32 1.442695, %v1046_v39 }
 0x2fe   : > { %v1039_v41 = vpop.xlane.xlu1 %1038  ;;  %v1036_v43 = vpop.xlane.xlu0 %1035 }
 0x2ff   : > { %2045 = vpow2.f32 %v1057_v40  ;;  %v1049_v44 = vsub.f32 %v1013_v17, %v1039_v41  ;;  %v1048_v45 = vsub.f32 %v969_v14, %v1036_v43 }
 0x300   : > { %v2038_v46 = vpop.eup %2037 }
 0x301   : > { %v1063_v47 = vmul.f32 1.442695, %v1049_v44  ;;  %v1061_v48 = vmul.f32 1.442695, %v1048_v45  ;;  %v1067_v49 = vsel %vm829_vm3, %v2038_v46, 0.0 }
 0x302   : > { %1068 = vadd.xlane.f32.xlu1 %v1067_v49  ;;  %v1042_v50 = vpop.xlane.xlu0 %1041 }
 0x303   : > { %2047 = vpow2.f32 %v1063_v47  ;;  %v1050_v51 = vsub.f32 %v1016_v22, %v1042_v50  ;;  %v1217_v22 = vsel %vm833_vm2, %v452_v18, 0 }
 0x304   : > { %v2040_v52 = vpop.eup %2039  ;;  %2049 = vpow2.f32 %v1061_v48 }
 0x305   : > { %v1065_v53 = vmul.f32 1.442695, %v1050_v51  ;;  %v1070_v54 = vsel %vm829_vm3, %v2040_v52, 0.0 }
 0x306   : > { %1071 = vadd.xlane.f32.xlu0 %v1070_v54 }
 0x307   : > { %2051 = vpow2.f32 %v1065_v53 }
 0x308   : > { %v2042_v55 = vpop.eup %2041 }
 0x309   : > { %v1073_v56 = vsel %vm829_vm3, %v2042_v55, 0.0  ;;  %v2044_v57 = vpop.eup %2043 }
 0x30a   : > { %1074 = vadd.xlane.f32.xlu1 %v1073_v56  ;;  %v1079_v59 = vsel %vm829_vm3, %v2044_v57, 0.0 }
 0x30c   : > { %v2046_v58 = vpop.eup %2045 }
 0x30d   : > { %v1076_v60 = vsel %vm829_vm3, %v2046_v58, 0.0 }
 0x30e   : > { %1080 = vadd.xlane.f32.xlu1 %v1079_v59  ;;  %1077 = vadd.xlane.f32.xlu0 %v1076_v60 }
 0x310   : > { %v2048_v61 = vpop.eup %2047 }
 0x311   : > { %v2050_v62 = vpop.eup %2049  ;;  %v1085_v63 = vsel %vm829_vm3, %v2048_v61, 0.0 }
 0x312   : > { %1086 = vadd.xlane.f32.xlu1 %v1085_v63  ;;  %v1082_v1 = vsel %vm829_vm3, %v2050_v62, 0.0 }
 0x313   : > { %1083 = vadd.xlane.f32.xlu0 %v1082_v1 }
 0x314   : > { %v2512_v2 = vpop.eup %2051 }
 0x315   : > { %v1088_v3 = vsel %vm829_vm3, %v2512_v2, 0.0 }
 0x317   : > { %1089 = vadd.xlane.f32.xlu0 %v1088_v3 }
 0x38b   : > { %v1069_v8 = vpop.xlane.xlu1 %1068 }
 0x38c   : > { %2053 = vrcp.f32 %v1069_v8 }
 0x38f   : > { %v1072_v9 = vpop.xlane.xlu0 %1071 }
 0x390   : > { %2055 = vrcp.f32 %v1072_v9 }
 0x393   : > { %v1075_v10 = vpop.xlane.xlu1 %1074 }
 0x394   : > { %2057 = vrcp.f32 %v1075_v10 }
 0x397   : > { %v1081_v11 = vpop.xlane.xlu1 %1080  ;;  %v1078_v12 = vpop.xlane.xlu0 %1077 }
 0x398   : > { %2059 = vrcp.f32 %v1081_v11 }
 0x399   : > { %v2054_v13 = vpop.eup %2053  ;;  %2061 = vrcp.f32 %v1078_v12 }
 0x39a   : > { %v1099_v14 = vmul.f32 %v2054_v13, %v2038_v46 }
 0x39b   : > { %v1087_v15 = vpop.xlane.xlu1 %1086 }
 0x39c   : > { %2063 = vrcp.f32 %v1087_v15  ;;  %v1084_v16 = vpop.xlane.xlu0 %1083  ;;  %1107 = vst.msk [vmem:[%s2526_s10] sm:$0xff] %vm829_vm3, %v1099_v14 }
 0x39d   : > { %v2056_v17 = vpop.eup %2055  ;;  %2065 = vrcp.f32 %v1084_v16 }
 0x39e   : > { %v1100_v19 = vmul.f32 %v2056_v17, %v2040_v52 }
 0x3a0   : > { %v1090_v20 = vpop.xlane.xlu0 %1089  ;;  %1108 = vst.msk [vmem:[%s2526_s10 + $0x8] sm:$0xff] %vm829_vm3, %v1100_v19  ;;  %v1115_v21 = vpack.c.bf16 %v1100_v19, %v1099_v14 }
 0x3a1   : > { %v2058_v23 = vpop.eup %2057  ;;  %2067 = vrcp.f32 %v1090_v20 }
 0x3a2   : > { %1927 = vmatmul.mubr.msk.bf16.vlgmr.msra.gmra.mxu0 %vm829_vm3, %v1115_v21  ;;  %v1101_v24 = vmul.f32 %v2058_v23, %v2042_v55 }
 0x3a3   : > { %1937 = vmatpush3.bf16.msra.mxu0 %v1217_v22  ;;  %1938 = vmatprep.mubr.msk.bf16.mxu0 %vm2214_vm0, %v2213_v0 }
 0x3a4   : > { %1109 = vst.msk [vmem:[%s2526_s10 + $0x10] sm:$0xff] %vm829_vm3, %v1101_v24 }
 0x3a5   : > { %v2060_v25 = vpop.eup %2059 }
 0x3a6   : > { %v2062_v26 = vpop.eup %2061  ;;  %v1103_v28 = vmul.f32 %v2060_v25, %v2044_v57 }
 0x3a7   : > { %v1102_v29 = vmul.f32 %v2062_v26, %v2046_v58 }
 0x3a8   : > { %1111 = vst.msk [vmem:[%s2526_s10 + $0x20] sm:$0xff] %vm829_vm3, %v1103_v28 }
 0x3a9   : > { %v2064_v30 = vpop.eup %2063  ;;  %1110 = vst.msk [vmem:[%s2526_s10 + $0x18] sm:$0xff] %vm829_vm3, %v1102_v29  ;;  %v1116_v32 = vpack.c.bf16 %v1102_v29, %v1101_v24 }
 0x3aa   : > { %v2066_v34 = vpop.eup %2065  ;;  %v1105_v35 = vmul.f32 %v2064_v30, %v2048_v61 }
 0x3ab   : > { %1933 = vmatmul.mubr.msk.bf16.vlgmr.msra.gmra.mxu1 %vm829_vm3, %v1116_v32  ;;  %v1104_v36 = vmul.f32 %v2066_v34, %v2050_v62 }
 0x3ac   : > { %1943 = vmatpush3.bf16.msra.mxu1 %v1264_v33  ;;  %1944 = vmatprep.mubr.msk.bf16.mxu1 %vm2214_vm0, %v2213_v0  ;;  %1113 = vst.msk [vmem:[%s2526_s10 + $0x30] sm:$0xff] %vm829_vm3, %v1105_v35 }
 0x3ad   : > { %1112 = vst.msk [vmem:[%s2526_s10 + $0x28] sm:$0xff] %vm829_vm3, %v1104_v36  ;;  %v1117_v37 = vpack.c.bf16 %v1104_v36, %v1103_v28 }
 0x3ae   : > { %v2068_v38 = vpop.eup %2067 }
 0x3af   : > { %1939 = vmatmul.mubr.msk.bf16.vlgmr.msra.gmra.mxu0 %vm829_vm3, %v1117_v37  ;;  %v1106_v39 = vmul.f32 %v2068_v38, %v2512_v2 }
 0x3b1   : > { %1114 = vst.msk [vmem:[%s2526_s10 + $0x38] sm:$0xff] %vm829_vm3, %v1106_v39  ;;  %v1118_v40 = vpack.c.bf16 %v1106_v39, %v1105_v35 }
 0x3b3   : > { %1945 = vmatmul.mubr.msk.bf16.vlgmr.msra.gmra.mxu1 %vm829_vm3, %v1118_v40 }
 0x462   : > { %v1159_v41 = vpop.f32.mrf.mxu0 }
 0x464   : > { %v1928_v43 = vpop.f32.mrf.mxu0 }
 0x466   : > { %v1162_v44 = vpop.f32.mrf.mxu0 }
 0x468   : > { %v1929_v45 = vpop.f32.mrf.mxu0 }
 0x46b   : > { %v1206_v0 = vpop.f32.mrf.mxu1 }
 0x46d   : > { %v1934_v46 = vpop.f32.mrf.mxu1 }
 0x46f   : > { %v1209_v47 = vpop.f32.mrf.mxu1  ;;  %v1253_v48 = vpop.f32.mrf.mxu0 }
 0x470   : > { %v1307_v51 = vcombine.low %v1159_v41, %v1253_v48  ;;  %v1308_v52 = vcombine.high %v1159_v41, %v1253_v48 }
 0x471   : > { %v1935_v49 = vpop.f32.mrf.mxu1  ;;  %v1940_v50 = vpop.f32.mrf.mxu0 }
 0x472   : > { %v1315_v59 = vrot.slane %v1307_v51, %v2438_v31  ;;  %v1322_v60 = vrot.slane %v1308_v52, %v2438_v31 }
 0x473   : > { %v1256_v53 = vpop.f32.mrf.mxu0  ;;  %v1300_v54 = vpop.f32.mrf.mxu1 }
 0x474   : > { %v1323_v55 = vcombine.low %v1206_v0, %v1300_v54  ;;  %v1324_v56 = vcombine.high %v1206_v0, %v1300_v54  ;;  %v1375_v63 = vcombine.low %v1162_v44, %v1256_v53  ;;  %v1376_v1 = vcombine.high %v1162_v44, %v1256_v53 }
 0x475   : > { %v1941_v57 = vpop.f32.mrf.mxu0  ;;  %v1946_v58 = vpop.f32.mrf.mxu1 }
 0x476   : > { %v1331_v61 = vrot.slane %v1323_v55, %v2438_v31  ;;  %v1338_v62 = vrot.slane %v1324_v56, %v2438_v31  ;;  %v1383_v14 = vrot.slane %v1375_v63, %v2438_v31  ;;  %v1390_v15 = vrot.slane %v1376_v1, %v2438_v31 }
 0x477   : > { %v1303_v2 = vpop.f32.mrf.mxu1 }
 0x478   : > { %v1339_v3 = vcombine.low %v1315_v59, %v1331_v61  ;;  %v1340_v4 = vcombine.high %v1315_v59, %v1331_v61  ;;  %v1355_v5 = vcombine.low %v1322_v60, %v1338_v62  ;;  %v1356_v6 = vcombine.high %v1322_v60, %v1338_v62 }
 0x479   : > { %v1391_v7 = vcombine.low %v1209_v47, %v1303_v2  ;;  %v1392_v8 = vcombine.high %v1209_v47, %v1303_v2  ;;  %v1947_v9 = vpop.f32.mrf.mxu1 }
 0x47a   : > { %v1347_v10 = vrot.slane %v1339_v3, %v2442_v42  ;;  %v1354_v11 = vrot.slane %v1340_v4, %v2442_v42  ;;  %v1363_v12 = vrot.slane %v1355_v5, %v2442_v42  ;;  %v1370_v13 = vrot.slane %v1356_v6, %v2442_v42 }
 0x47b   : > { %v1399_v16 = vrot.slane %v1391_v7, %v2438_v31  ;;  %v1406_v17 = vrot.slane %v1392_v8, %v2438_v31 }
 0x47c   : > { %v1443_v18 = vcombine.low %v1347_v10, %v1354_v11  ;;  %v1858_v19 = vcombine.high %v1347_v10, %v1354_v11  ;;  %v1459_v20 = vcombine.low %v1363_v12, %v1370_v13  ;;  %v1859_v21 = vcombine.high %v1363_v12, %v1370_v13 }
 0x47d   : > { %v1407_v22 = vcombine.low %v1383_v14, %v1399_v16  ;;  %v1408_v23 = vcombine.high %v1383_v14, %v1399_v16  ;;  %v1423_v24 = vcombine.low %v1390_v15, %v1406_v17  ;;  %v1424_v25 = vcombine.high %v1390_v15, %v1406_v17 }
 0x47e   : > { %v1450_v26 = vrot.slane %v1443_v18, %v2438_v31  ;;  %v1458_v27 = vrot.slane %v1858_v19, %v2438_v31  ;;  %v1466_v28 = vrot.slane %v1459_v20, %v2438_v31  ;;  %v1474_v29 = vrot.slane %v1859_v21, %v2438_v31 }
 0x47f   : > { %v1415_v30 = vrot.slane %v1407_v22, %v2442_v42  ;;  %v1422_v32 = vrot.slane %v1408_v23, %v2442_v42  ;;  %v1431_v33 = vrot.slane %v1423_v24, %v2442_v42  ;;  %v1438_v34 = vrot.slane %v1424_v25, %v2442_v42 }
 0x480   : > { %v1475_v35 = vcombine.low %v1450_v26, %v1458_v27  ;;  %v1491_v36 = vcombine.low %v1466_v28, %v1474_v29  ;;  %v1476_v37 = vcombine.high %v1450_v26, %v1458_v27  ;;  %v1492_v38 = vcombine.high %v1466_v28, %v1474_v29 }
 0x481   : > { %v1511_v39 = vcombine.low %v1415_v30, %v1422_v32  ;;  %v1860_v40 = vcombine.high %v1415_v30, %v1422_v32  ;;  %v1527_v41 = vcombine.low %v1431_v33, %v1438_v34  ;;  %v1861_v43 = vcombine.high %v1431_v33, %v1438_v34 }
 0x482   : > { %v1483_v44 = vrot.slane %v1475_v35, %v2442_v42  ;;  %v1499_v45 = vrot.slane %v1491_v36, %v2442_v42  ;;  %v1490_v50 = vrot.slane %v1476_v37, %v2442_v42  ;;  %v1506_v51 = vrot.slane %v1492_v38, %v2442_v42 }
 0x483   : > { %v1518_v0 = vrot.slane %v1511_v39, %v2438_v31  ;;  %v1526_v46 = vrot.slane %v1860_v40, %v2438_v31  ;;  %v1534_v47 = vrot.slane %v1527_v41, %v2438_v31  ;;  %v1542_v48 = vrot.slane %v1861_v43, %v2438_v31 }
 0x484   : > { %v1508_v49 = vcombine.high %v1483_v44, %v1499_v45  ;;  %v1507_v52 = vcombine.low %v1483_v44, %v1499_v45  ;;  %v1509_v59 = vcombine.low %v1490_v50, %v1506_v51  ;;  %v1510_v1 = vcombine.high %v1490_v50, %v1506_v51 }
 0x485   : > { %v1543_v53 = vcombine.low %v1518_v0, %v1526_v46  ;;  %v1559_v54 = vcombine.low %v1534_v47, %v1542_v48  ;;  %v1544_v55 = vcombine.high %v1518_v0, %v1526_v46  ;;  %v1560_v56 = vcombine.high %v1534_v47, %v1542_v48 }
 0x486   : > { %1581 = vrot.lane.b32.xlu1 %v1508_v49, %s2220_s21 }
 0x487   : > { %v1551_v57 = vrot.slane %v1543_v53, %v2442_v42  ;;  %v1567_v58 = vrot.slane %v1559_v54, %v2442_v42  ;;  %v1558_v31 = vrot.slane %v1544_v55, %v2442_v42  ;;  %v1574_v60 = vrot.slane %v1560_v56, %v2442_v42 }
 0x489   : > { %v1576_v61 = vcombine.high %v1551_v57, %v1567_v58  ;;  %v1575_v62 = vcombine.low %v1551_v57, %v1567_v58  ;;  %v1577_v63 = vcombine.low %v1558_v31, %v1574_v60  ;;  %v1578_v2 = vcombine.high %v1558_v31, %v1574_v60 }
 0x48a   : > { %1589 = vrot.lane.b32.xlu1 %v1509_v59, %s2221_s12 }
 0x48b   : > { %1583 = vrot.lane.b32.xlu0 %v1576_v61, %s2220_s21 }
 0x48e   : > { %1591 = vrot.lane.b32.xlu1 %v1577_v63, %s2221_s12 }
 0x48f   : > { %1597 = vrot.lane.b32.xlu0 %v1510_v1, %s2222_s14 }
 0x492   : > { %1599 = vrot.lane.b32.xlu1 %v1578_v2, %s2222_s14 }
 0x4f8   : > { %v1582_v3 = vpop.permute.xlu1 %1581 }
 0x4f9   : > { %v1603_v42 = vsel %vm829_vm3, %v1507_v52, %v1582_v3 }
 0x4fc   : > { %v1590_v4 = vpop.permute.xlu1 %1589 }
 0x4fd   : > { %v1584_v5 = vpop.permute.xlu0 %1583  ;;  %v1606_v7 = vsel %vm1605_vm4, %v1603_v42, %v1590_v4 }
 0x4fe   : > { %v1604_v10 = vsel %vm829_vm3, %v1575_v62, %v1584_v5 }
 0x500   : > { %v1592_v6 = vpop.permute.xlu1 %1591 }
 0x501   : > { %v1598_v8 = vpop.permute.xlu0 %1597  ;;  %v1607_v11 = vsel %vm1605_vm4, %v1604_v10, %v1592_v6 }
 0x502   : > { %v1609_v9 = vsel %vm1608_vm5, %v1606_v7, %v1598_v8 }
 0x503   : > { %1611 = vst.msk [vmem:[%s395_s23] sm:$0xff] %vm484_vm1, %v1609_v9 }
 0x504   : > { %v1600_v12 = vpop.permute.xlu1 %1599 }
 0x505   : > { %v1610_v13 = vsel %vm1608_vm5, %v1607_v11, %v1600_v12 }
 0x506   : > { %1612 = vst.msk [vmem:[%s395_s23 + $0x8] sm:$0xff] %vm484_vm1, %v1610_v13 }
 0x507   : > { %2136 = shalt.err (!%p2133_p7)
}
 0x508   : > { %s2137_s20 = scalar_lea.hbm %s2602_s28, 256  ;;  %s2141_s12 = scalar_lea.hbm %s2658_s6, 512 }
 0x509   : > { %p2138_p4 = scmp.ne.s32.totalorder %s2602_s28, %s2137_s20  ;;  %p2142_p11 = scmp.lt.s32.totalorder %s2602_s28, %s2658_s6 }
 0x50a   : > { %p2143_p10 = scmp.lt.s32.totalorder %s2141_s12, %s2137_s20 }
 0x50b   : > { %p2139_p6 = pnand %p2138_p4, %p2355_p13 }
 0x50c   : > { %p2144_p8 = por %p2143_p10, %p2142_p11 }
 0x50d   : > { %p2140_p9 = pneg %p2139_p6 }
 0x50f   : > { %p2145_p1 = pnand %p2144_p8, %p2140_p9 }
 0x511   : > { %2148 = shalt.err (!%p2145_p1)
}
 0x512   : > { %s2224_s4 = smov 128  }
 0x513   : > { %1954 = dma.vmem_to_hbm [thread:$0]  (%p2355_p13), %s2596_s19, 256, %s2602_s28, %s1614_s27, %s2224_s4, %s2224_s4, %s2220_s21  }
 0x514 PF: > { %s2683_s30 = sld [smem:[#allocation12_spill]]  ;;  %s1657_s16 = sand.u32 1, %s2187_s24  }
 0x515   : > { %p2685_p0 = scmp.ge.s32.totalorder %s2207_s29, 2  ;;  %s1658_s9 = scalar_lea.sflag [#allocation4], %s1657_s16 }
 0x51a   : > { %p2684_p12 = scmp.ne.s32.totalorder %s2683_s30, 0 }
 0x51c   : > { %p1965_p2 = pnand %p2685_p0, %p2684_p12 }
 0x51e   : > { %p1966_p3 = pneg %p1965_p2 }
 0x520   : > { %2182 = dma.done.wait (%p1966_p3), %s1658_s9, 256  }
 0x521   : > { %2184 = vsyncadd (%p1966_p3), %s1658_s9, 4294967040  ;;  %s25_s29 = sadd.s32 1, %s2207_s29   ;;  %s2686_s27 = sld [smem:[#allocation11_spill]] }
 0x522   : > { %p22_p5 = scmp.ge.s32.totalorder %s25_s29, 4   ;;  %s2687_s28 = sld [smem:[#allocation13_spill]] }
 0x523   : > { %s2688_s24 = smov %s2191_s25  ;;  %s2689_s25 = smov %s2195_s26 }
 0x524   : > { %s2690_s26 = smov %s2364_s18  ;;  %24 = sbr.rel (!%p22_p5) target bundleno = 9 (0x9), region = 114 }
 0x529   :  { %1675 = vsyncpa [#allocation3], 1 }
 0x52a   :  { %1677 = vsyncpa [#allocation3 + $0x1], 1 }
 0x52b   :  { %1678 = vsyncpa [#allocation6], 1 }
 0x52c   :  { %1679 = vsyncpa [#allocation4], 1 }
 0x52d   :  { %1681 = vsyncpa [#allocation4 + $0x1], 1 }

</bundles_post_ra>
